<compile_context>
chip_gen: v5e
topology: v5e:2x2
jax: 0.10.0
libtpu: 0.0.40
codegen_flags: <defaults>
</compile_context>

<pallas_src>
from functools import partial

import jax
import jax.numpy as jnp
from jax.experimental import pallas as pl
from jax.experimental.pallas import tpu as pltpu


def _round_up(x, m):
    return (x + m - 1) // m * m


# ----------------------------------------------------------------------------
# VMEM policy (generation aware)
# ----------------------------------------------------------------------------
def _vmem_budgets():
    """Returns (tile-chooser budget, vmem_limit_bytes)."""
    cap = None
    try:
        cap = getattr(pltpu.get_tpu_info(), "vmem_capacity_bytes", None)
    except Exception:
        cap = None
    if cap is None:
        cap = 64 * (1 << 20)
    if cap >= 100 * (1 << 20):          # v5e / v6e: 128 MiB physical VMEM
        return 88 * (1 << 20), 110 * (1 << 20)
    # v7x: 64 MiB per TensorCore -> stay conservative, leave headroom
    return 36 * (1 << 20), 48 * (1 << 20)


# ----------------------------------------------------------------------------
# DIRECT path: large Cin, stride 1 (no im2col staging)
# ----------------------------------------------------------------------------
def _direct_kernel(x_ref, w_ref, b_ref, o_ref, acc_ref, *, kh, kw, tile_h, wo):
    """One (batch, row-tile) grid step; one MXU dot per (i, j) tap.

    x_ref:   (tile_h + kh - 1, Wp, Cin)  halo'd padded input rows (compute dtype)
    w_ref:   (kh*kw*Cin, Cout_pad)       VMEM-resident weights (compute dtype)
    b_ref:   (1, Cout_pad)               f32 bias (zero in padded lanes)
    o_ref:   (tile_h*wo, Cout_pad)       lane-dense output tile (out dtype)
    acc_ref: (tile_h*wo, Cout_pad)       f32 accumulator scratch
    """
    cin = x_ref.shape[-1]
    m = tile_h * wo
    for i in range(kh):                 # static -> fully unrolled at trace time
        for j in range(kw):
            t = i * kw + j
            # Slice the *ref* per tap (small per-tap loads instead of holding
            # the whole halo block live in vregs).
            tap = x_ref[i:i + tile_h, j:j + wo, :].reshape(m, cin)
            contrib = jnp.dot(tap, w_ref[t * cin:(t + 1) * cin, :],
                              preferred_element_type=jnp.float32)
            if t == 0:
                acc_ref[...] = contrib
            else:
                acc_ref[...] += contrib
    o_ref[...] = (acc_ref[...] + b_ref[...]).astype(o_ref.dtype)


def _choose_tile_h(n, ho, wo, wp, cin, cout_pad, kh, kw, in_isz, out_isz, budget):
    """Largest output-row tile whose *fully accounted* working set fits budget.
    Counts double-buffered input/output blocks, double-buffered resident
    weights+bias, the f32 accumulator scratch and per-tap slice temporaries."""
    lane = lambda c: _round_up(c, 128)
    k = kh * kw * cin
    w_b = 2 * k * cout_pad * in_isz + 2 * 8 * cout_pad * 4
    feasible = []
    for th in range(1, ho + 1):
        if ho % th:
            continue
        m = th * wo
        if m % 8 and th != ho:
            continue
        in_b = 2 * (th + kh - 1) * _round_up(wp, 16) * lane(cin) * in_isz
        out_b = 2 * _round_up(m, 16) * cout_pad * out_isz
        acc_b = _round_up(m, 8) * cout_pad * 4
        tap_b = 2 * _round_up(m, 8) * lane(cin) * in_isz
        if w_b + in_b + out_b + acc_b + tap_b <= budget:
            feasible.append(th)
    if not feasible:
        return ho
    best = max(feasible)
    # v7x megacore balance: prefer an even total grid-step count when the
    # problem is big enough that per-step (~0.35us) overhead does not dominate.
    if (n * (ho // best)) % 2 == 1 and n * ho * wo * cout_pad >= (1 << 22):
        even = [t for t in feasible if (n * (ho // t)) % 2 == 0 and 2 * t >= best]
        if even:
            best = max(even)
    return best


# ----------------------------------------------------------------------------
# IM2COL path: small Cin and/or strided.  Patch built lane-densely in XLA,
# kernel is one matmul with the spatial dim on lanes and Cout on sublanes.
# ----------------------------------------------------------------------------
def _matmul_t_kernel(w_ref, p_ref, b_ref, o_ref):
    """(Cout_p, K) @ (K, tile_m) with f32 accumulation + bias; outputs on lanes."""
    acc = jnp.dot(w_ref[...], p_ref[...], preferred_element_type=jnp.float32)
    o_ref[...] = (acc + b_ref[...]).astype(o_ref.dtype)


def _choose_tile_m(m, k, cout_p, in_isz, out_isz, budget):
    lane = lambda c: _round_up(c, 128)
    w_bytes = 2 * _round_up(cout_p, 16) * lane(k) * in_isz \
        + 2 * _round_up(cout_p, 8) * 128 * 4
    per_col = 2 * _round_up(k, 16) * in_isz + 2 * _round_up(cout_p, 16) * out_isz
    avail = budget - w_bytes - (2 << 20)
    tile = max(128, (avail // max(per_col, 1)) // 128 * 128)
    tile = min(tile, _round_up(m, 128))
    # Keep >= 2 grid steps for big problems so both v7x TensorCores get work.
    if tile >= m and m >= (1 << 17):
        tile = _round_up(-(-m // 2), 128)
    return int(tile)


def _build_patches_t(x_nchw, kh, kw, sh, sw, pad_h, pad_w, compute_dtype):
    """Lane-dense im2col in XLA: returns (kh*kw*Cin, N*Ho*Wo) patches (spatial
    on the fast axis), plus (ho, wo)."""
    n, cin, h, w = x_nchw.shape
    hp, wp = h + 2 * pad_h, w + 2 * pad_w
    ho = (hp - kh) // sh + 1
    wo = (wp - kw) // sw + 1
    x_cn = jnp.transpose(x_nchw, (1, 0, 2, 3))            # outer-dim swap only
    x_cn = jnp.pad(x_cn, ((0, 0), (0, 0), (pad_h, pad_h), (pad_w, pad_w)))
    x_cn = x_cn.astype(compute_dtype)
    slabs = []
    for i in range(kh):
        for j in range(kw):
            slabs.append(x_cn[:, :, i:i + (ho - 1) * sh + 1:sh,
                              j:j + (wo - 1) * sw + 1:sw])  # (Cin, N, ho, wo)
    patch = jnp.stack(slabs, axis=0)                        # (kh*kw, Cin, N, ho, wo)
    patch = patch.reshape(kh * kw * cin, n * ho * wo)
    return patch, ho, wo


# ----------------------------------------------------------------------------
# Public wrapper
# ----------------------------------------------------------------------------
def conv2d_m(x_nchw, weight_oihw, bias, stride=(1, 1), *, pad_mode="constant",
             compute_dtype=jnp.bfloat16, out_dtype=None, tile_h=None, tile_m=None):
    """Pallas implementation of Conv2dM.forward.

    x_nchw:      (N, Cin, H, W)
    weight_oihw: (Cout, Cin, KH, KW)   -- odd KH, KW
    bias:        (Cout,)
    Returns (N, Cout, Ho, Wo) in out_dtype (defaults to compute_dtype=bf16; the
    kernel always accumulates in f32).
    """
    assert pad_mode == "constant"  # TODO(synk): reflect/replicate pad modes need an in-kernel halo fix-up.
    n, cin, h, w = x_nchw.shape
    cout, cin_w, kh, kw = weight_oihw.shape
    assert cin_w == cin
    assert kh % 2 == 1 and kw % 2 == 1
    sh, sw = int(stride[0]), int(stride[1])
    pad_h, pad_w = kh // 2, kw // 2
    hp, wp = h + 2 * pad_h, w + 2 * pad_w
    ho = (hp - kh) // sh + 1
    wo = (wp - kw) // sw + 1
    if out_dtype is None:
        out_dtype = compute_dtype
    in_isz = jnp.dtype(compute_dtype).itemsize
    out_isz = jnp.dtype(out_dtype).itemsize
    budget, vmem_limit = _vmem_budgets()
    kk = kh * kw * cin

    use_direct = (sh == 1 and sw == 1 and cin >= 64 and cin % 8 == 0)

    if use_direct:
        # ---------------- direct tap-accumulation path -----------------------
        cout_pad = _round_up(cout, 128)           # lane-dense output stores
        x_nhwc = jnp.transpose(x_nchw, (0, 2, 3, 1))
        x_pad = jnp.pad(x_nhwc, ((0, 0), (pad_h, pad_h), (pad_w, pad_w), (0, 0)))
        x_flat = x_pad.reshape(n * hp, wp, cin).astype(compute_dtype)
        # TODO(synk): fuse this pad/transpose/cast into the pallas operand
        # (CompilerParams(allow_input_fusion) or a clamped index_map + masked
        # boundary taps) so the activation is read from HBM only once.
        w_k = jnp.transpose(weight_oihw, (2, 3, 1, 0)).reshape(kk, cout)
        w_k = jnp.pad(w_k, ((0, 0), (0, cout_pad - cout))).astype(compute_dtype)
        b_k = jnp.pad(bias, (0, cout_pad - cout)).reshape(1, cout_pad).astype(jnp.float32)

        if tile_h is None:
            tile_h = _choose_tile_h(n, ho, wo, wp, cin, cout_pad, kh, kw,
                                    in_isz, out_isz, budget)
        assert ho % tile_h == 0, "tile_h must divide the output height"
        assert (tile_h * wo) % 8 == 0 or tile_h == ho, \
            "output tile rows must be sublane(8)-aligned"
        n_row = ho // tile_h
        th_in = tile_h + kh - 1                   # halo of kh-1 extra input rows

        out_flat = pl.pallas_call(
            partial(_direct_kernel, kh=kh, kw=kw, tile_h=tile_h, wo=wo),
            out_shape=jax.ShapeDtypeStruct((n * ho * wo, cout_pad), out_dtype),
            grid=(n, n_row),
            in_specs=[
                # Halo'd row window: element offset along the flattened (N*Hp)
                # axis; last two dims are full-extent (lanes = channels).
                pl.BlockSpec(
                    (pl.Element(th_in), pl.Blocked(wp), pl.Blocked(cin)),
                    lambda b, r: (b * hp + r * tile_h, 0, 0)),
                # Weights / bias: constant index_map -> stay resident in VMEM
                # across the whole grid (double-buffer cost is accounted in the
                # tile chooser).
                pl.BlockSpec((kk, cout_pad), lambda b, r: (0, 0)),
                pl.BlockSpec((1, cout_pad), lambda b, r: (0, 0)),
            ],
            out_specs=pl.BlockSpec((tile_h * wo, cout_pad),
                                   lambda b, r: (b * n_row + r, 0)),
            scratch_shapes=[pltpu.VMEM((tile_h * wo, cout_pad), jnp.float32)],
            compiler_params=pltpu.CompilerParams(
                dimension_semantics=("parallel", "parallel"),
                vmem_limit_bytes=vmem_limit),
        )(x_flat, w_k, b_k)

        # Single fused XLA epilogue: drop zero lanes, NHWC -> NCHW.
        y = out_flat[:, :cout].reshape(n, ho, wo, cout)
        y = jnp.transpose(y, (0, 3, 1, 2))
        return y.astype(out_dtype)

    # -------------------- im2col path (small Cin / strided) ------------------
    # Cout only padded to the sublane multiple -> no 128-lane writeback blowup.
    cout_p = _round_up(cout, 16 if out_isz == 2 else 8)
    patch_t, ho, wo = _build_patches_t(x_nchw, kh, kw, sh, sw, pad_h, pad_w,
                                       compute_dtype)          # (K, M)
    w_t = jnp.transpose(weight_oihw, (0, 2, 3, 1)).reshape(cout, kk)
    w_t = jnp.pad(w_t, ((0, cout_p - cout), (0, 0))).astype(compute_dtype)
    b_t = jnp.pad(bias, (0, cout_p - cout)).reshape(cout_p, 1).astype(jnp.float32)

    m = n * ho * wo
    if tile_m is None:
        tile_m = _choose_tile_m(m, kk, cout_p, in_isz, out_isz, budget)
    m_pad = _round_up(m, tile_m)
    if m_pad != m:
        patch_t = jnp.pad(patch_t, ((0, 0), (0, m_pad - m)))
    # TODO(synk): tile K / Cout as well for the (rare) case where the resident
    # weight block alone would exceed the VMEM budget.

    out_t = pl.pallas_call(
        _matmul_t_kernel,
        out_shape=jax.ShapeDtypeStruct((cout_p, m_pad), out_dtype),
        grid=(m_pad // tile_m,),
        in_specs=[
            pl.BlockSpec((cout_p, kk), lambda i: (0, 0)),     # resident weights
            pl.BlockSpec((kk, tile_m), lambda i: (0, i)),     # spatial on lanes
            pl.BlockSpec((cout_p, 1), lambda i: (0, 0)),      # resident bias
        ],
        out_specs=pl.BlockSpec((cout_p, tile_m), lambda i: (0, i)),
        compiler_params=pltpu.CompilerParams(
            dimension_semantics=("parallel",),
            vmem_limit_bytes=vmem_limit),
    )(w_t, patch_t, b_t)

    # Outer-dim swap only ((Ho, Wo) stay minor): cheap fused epilogue.
    y = out_t[:cout, :m].reshape(cout, n, ho, wo)
    y = jnp.transpose(y, (1, 0, 2, 3))
    return y.astype(out_dtype)


# ----------------------------------------------------------------------------
# Self-test
# ----------------------------------------------------------------------------
if __name__ == "__main__":
    key = jax.random.PRNGKey(0)

    def reference(x, wgt, b, stride, pad):
        # Same bf16-rounded operands the kernel feeds the MXU, f32 accumulation.
        xq = x.astype(jnp.bfloat16).astype(jnp.float32)
        wq = wgt.astype(jnp.bfloat16).astype(jnp.float32)
        y = jax.lax.conv_general_dilated(
            xq, wq, window_strides=stride,
            padding=((pad[0], pad[0]), (pad[1], pad[1])),
            dimension_numbers=("NCHW", "OIHW", "NCHW"),
            preferred_element_type=jnp.float32,
            precision=jax.lax.Precision.HIGHEST)
        return y + b.reshape(1, -1, 1, 1)

    def check(name, y, y_ref):
        y = jnp.asarray(y, jnp.float32)
        assert y.shape == y_ref.shape, (name, y.shape, y_ref.shape)
        tol = 3e-2 * float(jnp.max(jnp.abs(y_ref))) + 1e-3   # bf16-output tolerance
        err = float(jnp.max(jnp.abs(y - y_ref)))
        assert err < tol, (name, err, tol)

    # 1) module config Conv2dM(4, 8, (3, 3), stride=[1, 1])  -> im2col path
    N, CIN, H, W, COUT, KH, KW = 2, 4, 16, 16, 8, 3, 3
    k1, k2, k3, k4 = jax.random.split(key, 4)
    x = jax.random.normal(k1, (N, CIN, H, W), jnp.float32)
    wgt = jax.random.normal(k2, (COUT, CIN, KH, KW), jnp.float32) * 0.1
    b = jax.random.normal(k3, (COUT,), jnp.float32) * 0.1

    y1 = conv2d_m(x, wgt, b, stride=(1, 1))
    jax.block_until_ready(y1)
    check("im2col/stride1", y1, reference(x, wgt, b, (1, 1), (KH // 2, KW // 2)))

    # 2) strided variant: stride handled natively by the im2col path
    y2 = conv2d_m(x, wgt, b, stride=(2, 2))
    jax.block_until_ready(y2)
    check("im2col/stride2", y2, reference(x, wgt, b, (2, 2), (KH // 2, KW // 2)))

    # 3) large-Cin config -> direct accumulation path (tile_h=8 => 2 halo'd row tiles)
    N2, CIN2, COUT2 = 1, 64, 128
    x2 = jax.random.normal(k4, (N2, CIN2, H, W), jnp.float32)
    w2 = jax.random.normal(k2, (COUT2, CIN2, KH, KW), jnp.float32) * 0.05
    b2 = jax.random.normal(k3, (COUT2,), jnp.float32) * 0.1
    y3 = conv2d_m(x2, w2, b2, stride=(1, 1), tile_h=8)
    jax.block_until_ready(y3)
    check("direct/stride1", y3, reference(x2, w2, b2, (1, 1), (KH // 2, KW // 2)))

    print("KERNEL_OK")
</pallas_src>

<mosaic_0001>
module attributes {stable_mosaic.version = 11 : i64} {
  func.func @_matmul_t_kernel(%arg0: i32, %arg1: memref<16x36xbf16, #tpu.memory_space<vmem>>, %arg2: memref<36x512xbf16, #tpu.memory_space<vmem>>, %arg3: memref<16x1xf32, #tpu.memory_space<vmem>>, %arg4: memref<16x512xbf16, #tpu.memory_space<vmem>>) attributes {dimension_semantics = [#tpu.dimension_semantics<parallel>], iteration_bounds = array<i64: 1>, scalar_prefetch = 0 : i64, scratch_operands = 0 : i64, tpu.core_type = #tpu.core_type<tc>, window_params = [{pipeline_mode = #tpu.pipeline_mode<synchronous>, transform_indices = @transform_0, window_bounds = array<i64: 16, 36>}, {transform_indices = @transform_1, window_bounds = array<i64: 36, 512>}, {pipeline_mode = #tpu.pipeline_mode<synchronous>, transform_indices = @transform_2, window_bounds = array<i64: 16, 1>}, {transform_indices = @transform_3, window_bounds = array<i64: 16, 512>}]} {
    %c0 = arith.constant 0 : index
    %c0_0 = arith.constant 0 : index
    %0 = vector.load %arg1[%c0, %c0_0] : memref<16x36xbf16, #tpu.memory_space<vmem>>, vector<16x36xbf16>
    %c0_1 = arith.constant 0 : index
    %c0_2 = arith.constant 0 : index
    %1 = vector.load %arg2[%c0_1, %c0_2] : memref<36x512xbf16, #tpu.memory_space<vmem>>, vector<36x512xbf16>
    %cst = arith.constant dense<0.000000e+00> : vector<16x512xf32>
    %2 = tpu.matmul %0, %1, %cst {dimension_numbers = #tpu.dot_dimension_numbers<[1], [0], [0], [1], [0, 0, 1, 1], [], []>} : vector<16x36xbf16>, vector<36x512xbf16>, vector<16x512xf32> -> vector<16x512xf32>
    %c0_3 = arith.constant 0 : index
    %c0_4 = arith.constant 0 : index
    %3 = vector.load %arg3[%c0_3, %c0_4] : memref<16x1xf32, #tpu.memory_space<vmem>>, vector<16x1xf32>
    %4 = vector.broadcast %3 : vector<16x1xf32> to vector<16x512xf32>
    %5 = arith.addf %2, %4 : vector<16x512xf32>
    %6 = arith.truncf %5 : vector<16x512xf32> to vector<16x512xbf16>
    %c0_5 = arith.constant 0 : index
    %c0_6 = arith.constant 0 : index
    %7 = vector.load %arg4[%c0_5, %c0_6] : memref<16x512xbf16, #tpu.memory_space<vmem>>, vector<16x512xbf16>
    tpu.vector_store %arg4[%c0_5, %c0_6], %6 {strides = array<i32>} : memref<16x512xbf16, #tpu.memory_space<vmem>>, vector<16x512xbf16>,
    return
  }
  func.func @transform_0(%arg0: i32) -> (i32, i32) {
    %c0_i32 = arith.constant 0 : i32
    %c0_i32_0 = arith.constant 0 : i32
    %c0_i32_1 = arith.constant 0 : i32
    return %c0_i32, %c0_i32_0 : i32, i32
  }
  func.func @transform_1(%arg0: i32) -> (i32, i32) {
    %c0_i32 = arith.constant 0 : i32
    %c0_i32_0 = arith.constant 0 : i32
    return %c0_i32, %arg0 : i32, i32
  }
  func.func @transform_2(%arg0: i32) -> (i32, i32) {
    %c0_i32 = arith.constant 0 : i32
    %c0_i32_0 = arith.constant 0 : i32
    %c0_i32_1 = arith.constant 0 : i32
    return %c0_i32, %c0_i32_0 : i32, i32
  }
  func.func @transform_3(%arg0: i32) -> (i32, i32) {
    %c0_i32 = arith.constant 0 : i32
    %c0_i32_0 = arith.constant 0 : i32
    return %c0_i32, %arg0 : i32, i32
  }
}

</mosaic_0001>

<bundles_post_ra>
// kernel: tpu_custom_call.1
= control target key start
LH: loop header
LB: loop body
LE: loop exit
PB: predicated region body
PF: predicated region fallthrough
CT: control target
= control target key end

     0   :  { %8 = vsyncpa [#allocation3], 0  ;;  %s368_s0 = inlined_call_operand.vmem [shape: bf16[16,36], index: 0, kind: input, shape index: {}]   ;;  %s369_s1 = inlined_call_operand.hbm [shape: bf16[36,512], index: 1, kind: input, shape index: {}]   ;;  %s370_s2 = inlined_call_operand.vmem [shape: f32[16,1], index: 2, kind: input, shape index: {}]   ;;  %s371_s3 = inlined_call_operand.hbm [shape: bf16[16,512], index: 3, kind: output, shape index: {}]  }
   0x1   :  { %9 = vsyncpa [#allocation4], 0  ;;  %s16_s14 = sshll.u32 %s369_s1, 4  ;;  %s318_s15 = smov [#allocation2]   ;;  %s17_s14 = int_to_ptr.hbm [resolvable:$true] %s16_s14 }
   0x2   :  { %s18_s16 = sshll.u32 %s318_s15, 4  ;;  %s319_s17 = smov 256   ;;  %s19_s16 = int_to_ptr.vmem [resolvable:$true] %s18_s16 }
   0x3   :  { %s320_s18 = smov 16  }
   0x4   :  { %24 = dma.hbm_to_vmem [thread:$0]  %s17_s14, 1280, %s19_s16, [#allocation3], %s319_s17, %s319_s17, %s320_s18  }
   0x5   :  { %314 = dma.done.wait [#allocation3], 1280  }
   0x6   :  { %315 = vsyncadd [#allocation3], 4294966016  ;;  %v321_v0 = vmov 0   ;;  %v42_v1 = vld [vmem:[#allocation2 + $0x40] sm:$0x33]  ;;  %vm115_vm0 = vcmask 1041408  }
   0x7   :  { %265 = vset.pattern.permute.xlu0 %v321_v0  ;;  %v43_v2 = vld [vmem:[#allocation2 + $0x48] sm:$0x33]  ;;  %v87_v3 = vunpack.c.l.b16 %v42_v1  ;;  %v88_v4 = vunpack.c.h.b16 %v42_v1  ;;  %v233_v7 = vld [vmem:[#allocation2 + $0x20] sm:$0xf]  ;;  %v258_v8 = vld [vmem:[#allocation2 + $0x2c] sm:$0xf0] }
   0x8   :  { %v89_v5 = vunpack.c.l.b16 %v43_v2  ;;  %v90_v6 = vunpack.c.h.b16 %v43_v2  ;;  %v256_v13 = vld [vmem:[#allocation2 + $0x24] sm:$0xf]  ;;  %v235_v14 = vld [vmem:[#allocation2 + $0x30] sm:$0xf0]  ;;  %v241_v15 = vld [vmem:[#allocation2 + $0x28] sm:$0xf]  ;;  %v234_v23 = vor.u32 %v258_v8, %v233_v7 }
   0x9   :  { %v99_v9 = vpack.c.b16 %v87_v3, %v87_v3  ;;  %v100_v10 = vpack.c.b16 %v88_v4, %v88_v4  ;;  %v259_v16 = vld [vmem:[#allocation2 + $0x34] sm:$0xf0]  ;;  %v257_v17 = vld [vmem:[#allocation2 + $0x2c] sm:$0xf]  ;;  %v243_v18 = vld [vmem:[#allocation2 + $0x38] sm:$0xf0]  ;;  %v238_v24 = vor.u32 %v256_v13, %v235_v14 }
   0xa   :  { %v101_v11 = vpack.c.b16 %v89_v5, %v89_v5  ;;  %v102_v12 = vpack.c.b16 %v90_v6, %v90_v6  ;;  %v217_v25 = vld [vmem:[#allocation2] sm:$0xf]  ;;  %v254_v26 = vld [vmem:[#allocation2 + $0xc] sm:$0xf0]  ;;  %v252_v27 = vld [vmem:[#allocation2 + $0x4] sm:$0xf]  ;;  %v242_v28 = vor.u32 %v259_v16, %v241_v15  ;;  %v246_v29 = vor.u32 %v257_v17, %v243_v18 }
   0xb   :  { %v117_v19 = vsel %vm115_vm0, %v99_v9, 0  ;;  %v120_v20 = vsel %vm115_vm0, %v100_v10, 0  ;;  %v219_v30 = vld [vmem:[#allocation2 + $0x10] sm:$0xf0]  ;;  %v225_v31 = vld [vmem:[#allocation2 + $0x8] sm:$0xf]  ;;  %v218_v36 = vor.u32 %v254_v26, %v217_v25 }
   0xc   :  { %v123_v21 = vsel %vm115_vm0, %v101_v11, 0  ;;  %v126_v22 = vsel %vm115_vm0, %v102_v12, 0  ;;  %133 = vmatpush.bf16.msra.mxu0 %v117_v19  ;;  %147 = vmatpush.bf16.msra.mxu1 %v120_v20  ;;  %v44_v32 = vld [vmem:[%s370_s2] sm:$0xff]  ;;  %v255_v33 = vld [vmem:[#allocation2 + $0x14] sm:$0xf0]  ;;  %v222_v37 = vor.u32 %v252_v27, %v219_v30  ;;  %v45_v41 = vld [vmem:[%s370_s2 + $0x8] sm:$0xff] }
   0xd   :  { %161 = vmatpush.bf16.msra.mxu2 %v123_v21  ;;  %175 = vmatpush.bf16.msra.mxu3 %v126_v22  ;;  %v253_v34 = vld [vmem:[#allocation2 + $0xc] sm:$0xf]  ;;  %v227_v35 = vld [vmem:[#allocation2 + $0x18] sm:$0xf0]  ;;  %v226_v38 = vor.u32 %v255_v33, %v225_v31  ;;  %v251_v40 = vld [vmem:[%s368_s0] sm:$0xff]  ;;  %vm111_vm1 = vcmask 293888  }
   0xe   :  { %48 = vperm.xlu0 %265, %v44_v32   ;;  %v230_v39 = vor.u32 %v253_v34, %v227_v35  ;;  %s322_s0 = smov [#allocation5]   ;;  %s198_s26 = sshll.u32 %s371_s3, 4  ;;  %s199_s26 = int_to_ptr.hbm [resolvable:$true] %s198_s26 }
   0xf   :  { %s196_s2 = sshll.u32 %s322_s0, 4  ;;  %s197_s2 = int_to_ptr.vmem [resolvable:$true] %s196_s2 }
  0x10   :  { %134 = vmatpush.bf16.msra.mxu0 %v234_v23  ;;  %148 = vmatpush.bf16.msra.mxu1 %v238_v24 }
  0x11   :  { %162 = vmatpush.bf16.msra.mxu2 %v242_v28  ;;  %176 = vmatpush.bf16.msra.mxu3 %v246_v29 }
  0x14   :  { %135 = vmatpush.bf16.msra.mxu0 %v218_v36  ;;  %149 = vmatpush.bf16.msra.mxu1 %v222_v37 }
  0x15   :  { %163 = vmatpush.bf16.msra.mxu2 %v226_v38  ;;  %177 = vmatpush.bf16.msra.mxu3 %v230_v39 }
  0x16   :  { %53 = vperm.xlu0 %265, %v45_v41  }
  0x17   :  { %247 = vmatmul.msk.bf16.vlgmr.msra.gmra.mxu0 %vm111_vm1, %v251_v40  ;;  %248 = vmatmul.msk.bf16.vlgmr.msra.gmra.mxu1 %vm111_vm1, %v251_v40 }
  0x18   :  { %249 = vmatmul.msk.bf16.vlgmr.msra.gmra.mxu2 %vm111_vm1, %v251_v40  ;;  %250 = vmatmul.msk.bf16.vlgmr.msra.gmra.mxu3 %vm111_vm1, %v251_v40 }
  0x80   :  { %v49_v42 = vpop.permute.xlu0 %48 }
  0x88   :  { %v54_v48 = vpop.permute.xlu0 %53 }
  0x94   :  { %v137_v43 = vpop.f32.mrf.mxu0  ;;  %v151_v44 = vpop.f32.mrf.mxu1 }
  0x95   :  { %v138_v45 = vadd.f32 %v137_v43, %v49_v42  ;;  %v152_v46 = vadd.f32 %v151_v44, %v49_v42 }
  0x97   :  { %v184_v47 = vpack.c.bf16 %v152_v46, %v138_v45 }
  0x99   :  { %188 = vst [vmem:[#allocation5] sm:$0xff] %v184_v47 }
  0x9b   :  { %v165_v49 = vpop.f32.mrf.mxu2  ;;  %v179_v50 = vpop.f32.mrf.mxu3 }
  0x9c   :  { %v166_v51 = vadd.f32 %v165_v49, %v49_v42  ;;  %v180_v52 = vadd.f32 %v179_v50, %v49_v42  ;;  %v139_v53 = vpop.f32.mrf.mxu0  ;;  %v153_v54 = vpop.f32.mrf.mxu1 }
  0x9d   :  { %v140_v55 = vadd.f32 %v139_v53, %v54_v48  ;;  %v154_v56 = vadd.f32 %v153_v54, %v54_v48 }
  0x9e   :  { %v185_v57 = vpack.c.bf16 %v180_v52, %v166_v51 }
  0x9f   :  { %v186_v58 = vpack.c.bf16 %v154_v56, %v140_v55 }
  0xa0   :  { %189 = vst [vmem:[#allocation5 + $0x8] sm:$0xff] %v185_v57 }
  0xa1   :  { %190 = vst [vmem:[#allocation5 + $0x10] sm:$0xff] %v186_v58 }
  0xa3   :  { %v167_v59 = vpop.f32.mrf.mxu2  ;;  %v181_v60 = vpop.f32.mrf.mxu3 }
  0xa4   :  { %v168_v61 = vadd.f32 %v167_v59, %v54_v48  ;;  %v182_v62 = vadd.f32 %v181_v60, %v54_v48 }
  0xa6   :  { %v187_v63 = vpack.c.bf16 %v182_v62, %v168_v61 }
  0xa8   :  { %191 = vst [vmem:[#allocation5 + $0x18] sm:$0xff] %v187_v63 }
  0xa9   :  { %204 = dma.vmem_to_hbm [thread:$0]  %s197_s2, 512, %s199_s26, [#allocation4], %s319_s17, %s319_s17, %s320_s18  }
  0xaa   :  { %316 = dma.done.wait [#allocation4], 512  }
  0xab   :  { %317 = vsyncadd [#allocation4], 4294966784 }
  0xac   :  { %209 = vsyncpa [#allocation3], 1 }
  0xad   :  { %210 = vsyncpa [#allocation4], 1 }

</bundles_post_ra>
